<compile_context>
chip_gen: v7x
topology: tpu7x:2x2x1
jax: 0.10.0
libtpu: 0.0.40
codegen_flags: <defaults>
</compile_context>

<pallas_src>
import functools
import math

import jax
import jax.numpy as jnp
from jax import lax
from jax.experimental import pallas as pl
from jax.experimental.pallas import tpu as pltpu

EPS = 1e-6
_LANES = 128
_SUBLANES = 8
_MAX_BLOCK_ROWS = 256     # rows per output block (sublane axis)
_MAX_BLOCK_COLS = 2048    # lanes per output block (lane axis)

# lowbias32 hash constants, expressed as (wrapped) int32 so the whole hash runs on
# plain int32 vectors.  Logical right shifts are emulated with arithmetic shift + mask.
_H1 = 0x7FEB352D           # fits int32
_H2 = -2073057653          # 0x846CA68B as int32
_PHI = -1640531527         # 0x9E3779B9 as int32


def _round_up(x, m):
    return ((x + m - 1) // m) * m


def _pick_block(n, align, max_block):
    """Largest `align`-multiple block <= max_block dividing round_up(n, align)."""
    n_al = _round_up(max(int(n), 1), align)
    block = align
    for cand in range(align, min(n_al, max_block) + 1, align):
        if n_al % cand == 0:
            block = cand
    return block, n_al


def _lsr(x, k):
    """Logical right shift for int32 vectors (mask off sign-extended high bits)."""
    return jnp.right_shift(x, k) & ((1 << (32 - k)) - 1)


def _uniform_from_index(idx, seed):
    """Counter-based U[0,1) from int32 element indices (lowbias32 finalizer)."""
    x = idx ^ (seed * _PHI)
    x = x ^ _lsr(x, 16)
    x = x * _H1
    x = x ^ _lsr(x, 15)
    x = x * _H2
    x = x ^ _lsr(x, 16)
    # top 24 bits -> float32 in [0, 1)
    return _lsr(x, 8).astype(jnp.float32) * (1.0 / 16777216.0)


def _gumbel_kernel(seed_ref, row_ref, out_ref, *, inv_tau, hard, total_cols):
    """One (BR, BC) output tile: in-kernel uniform noise + gumbel-sigmoid / hard compare.

    row_ref : (1, BC) resident row — hard threshold sigmoid(-log_alpha) if `hard`,
              otherwise log_alpha itself (broadcast over sublanes in-kernel).
    """
    i = pl.program_id(0)
    j = pl.program_id(1)
    br, bc = out_ref.shape

    # Global element index inside the padded (R, C) slab -> independent, reproducible
    # per-element random stream (unique mod 2**32).
    rows = lax.broadcasted_iota(jnp.int32, (br, bc), 0) + i * br
    cols = lax.broadcasted_iota(jnp.int32, (br, bc), 1) + j * bc
    idx = rows * total_cols + cols

    u = _uniform_from_index(idx, seed_ref[0])
    u = jnp.clip(u, EPS, 1.0 - EPS)          # matches torch.clip(u, EPS, 1-EPS)

    row = row_ref[...]                       # (1, bc), broadcasts over sublanes

    if hard:
        # (y_soft > 0.5)  <=>  (u > sigmoid(-log_alpha))   for tau > 0.
        out_ref[...] = (u > row).astype(jnp.float32)
    else:
        logistic = jnp.log(u) - jnp.log(1.0 - u)
        z = (row + logistic) * inv_tau
        out_ref[...] = 1.0 / (1.0 + jnp.exp(-z))


def make_gumbel_matrix_log_alpha(shape, init_value):
    """Deterministic parameter init, matching GumbelMatrix.reset_parameters."""
    log_alpha_init = -math.log(1.0 / init_value - 1.0)
    return jnp.full(shape, log_alpha_init, dtype=jnp.float32)


def gumbel_matrix_forward(log_alpha, bs, *, tau=1.0, drawhard=True,
                          training=True, seed=0):
    log_alpha = jnp.asarray(log_alpha, jnp.float32)

    if not training:
        # Eval path: deterministic threshold (glue; no stochastic hot path).
        return (log_alpha > 0).astype(jnp.float32)

    assert tau > 0, "tau must be positive"

    s_shape = tuple(log_alpha.shape)
    bs_t = tuple(bs) if bs is not None else ()
    noise_shape = s_shape + bs_t
    out_full = tuple(jnp.broadcast_shapes(s_shape, noise_shape))
    if out_full != noise_shape:
        # TODO(synk): configs where log_alpha dims exceed the aligned noise dims would
        # need noise replication; torch-valid configs never hit this.
        raise ValueError("unsupported broadcast configuration")

    k = len(s_shape)
    trail = noise_shape[len(noise_shape) - k:] if k else ()
    lead = noise_shape[:len(noise_shape) - k] if k else noise_shape
    lead_n = math.prod(lead) if lead else 1
    trail_n = math.prod(trail) if trail else 1

    # torch broadcasting is right-aligned: log_alpha maps onto the trailing dims.
    la_row = jnp.broadcast_to(log_alpha, trail).reshape(1, max(trail_n, 1))
    if drawhard:
        row_vals = jax.nn.sigmoid(-la_row)   # hard threshold = 1 - sigmoid(log_alpha)
    else:
        row_vals = la_row

    bc, c_total = _pick_block(trail_n, _LANES, _MAX_BLOCK_COLS)
    br, r_total = _pick_block(lead_n, _SUBLANES, _MAX_BLOCK_ROWS)

    row_padded = jnp.pad(row_vals, ((0, 0), (0, c_total - trail_n)))
    seed_arr = jnp.asarray([seed], dtype=jnp.int32)

    kernel = functools.partial(_gumbel_kernel, inv_tau=float(1.0 / tau),
                               hard=bool(drawhard), total_cols=c_total)

    out2d = pl.pallas_call(
        kernel,
        out_shape=jax.ShapeDtypeStruct((r_total, c_total), jnp.float32),
        grid_spec=pltpu.PrefetchScalarGridSpec(
            num_scalar_prefetch=1,
            grid=(r_total // br, c_total // bc),
            in_specs=[pl.BlockSpec((1, bc), lambda i, j, seed: (0, j))],
            out_specs=pl.BlockSpec((br, bc), lambda i, j, seed: (i, j)),
        ),
        compiler_params=pltpu.CompilerParams(
            dimension_semantics=("parallel", "parallel")),
    )(seed_arr, row_padded)

    return out2d[:lead_n, :trail_n].reshape(noise_shape)


if __name__ == "__main__":
    key = jax.random.PRNGKey(0)

    # Module config: GumbelMatrix(shape=(4, 8), init_value=0.7); forward(bs=(2, 4, 8)).
    shape = (4, 8)
    init_value = 0.7
    bs = (2, 4, 8)

    log_alpha = make_gumbel_matrix_log_alpha(shape, init_value)
    seed = int(jax.random.randint(key, (), 0, 2 ** 31 - 1, dtype=jnp.int32))

    # Training path (hard straight-through sample).
    sample = gumbel_matrix_forward(log_alpha, bs, tau=1.0, drawhard=True,
                                   training=True, seed=seed)
    sample = jax.block_until_ready(sample)
    assert sample.shape == shape + bs, sample.shape
    assert sample.dtype == jnp.float32
    assert bool(jnp.all((sample == 0.0) | (sample == 1.0)))
    frac = float(sample.mean())             # E[sample] ~= sigmoid(log_alpha) = 0.7
    assert 0.55 < frac < 0.85, frac

    # Determinism with the same seed.
    sample2 = jax.block_until_ready(
        gumbel_matrix_forward(log_alpha, bs, tau=1.0, drawhard=True,
                              training=True, seed=seed))
    assert bool(jnp.all(sample == sample2))

    # Soft path (drawhard=False) with the same noise; hard sample should agree with
    # thresholding the soft sample (validates the compare-only hard rewrite).
    soft = jax.block_until_ready(
        gumbel_matrix_forward(log_alpha, bs, tau=1.0, drawhard=False,
                              training=True, seed=seed))
    assert soft.shape == shape + bs
    assert bool(jnp.all((soft > 0.0) & (soft < 1.0)))
    agree = float(jnp.mean((sample == (soft > 0.5).astype(jnp.float32))
                           .astype(jnp.float32)))
    assert agree > 0.999, agree

    # Eval path.
    eval_sample = jax.block_until_ready(
        gumbel_matrix_forward(log_alpha, bs, training=False))
    assert eval_sample.shape == shape
    assert bool(jnp.all(eval_sample == 1.0))   # log_alpha > 0 for init_value=0.7

    print("KERNEL_OK")
</pallas_src>

<mosaic_0001>
module attributes {stable_mosaic.version = 11 : i64} {
  func.func @_gumbel_kernel(%arg0: i32, %arg1: i32, %arg2: memref<1xi32, #tpu.memory_space<smem>>, %arg3: memref<1x128xf32, #tpu.memory_space<vmem>>, %arg4: memref<64x128xf32, #tpu.memory_space<vmem>>) attributes {dimension_semantics = [#tpu.dimension_semantics<parallel>, #tpu.dimension_semantics<parallel>], iteration_bounds = array<i64: 1, 1>, scalar_prefetch = 1 : i64, scratch_operands = 0 : i64, tpu.core_type = #tpu.core_type<tc>, window_params = [{transform_indices = @transform_0, window_bounds = array<i64: 1, 128>}, {transform_indices = @transform_1, window_bounds = array<i64: 64, 128>}]} {
    %0 = tpu.iota {dimensions = array<i32: 0>} : vector<64x128xi32>
    %c64_i32 = arith.constant 64 : i32
    %1 = arith.muli %arg0, %c64_i32 : i32
    %2 = vector.broadcast %1 : i32 to vector<64x128xi32>
    %3 = arith.addi %0, %2 : vector<64x128xi32>
    %4 = tpu.iota {dimensions = array<i32: 1>} : vector<64x128xi32>
    %c128_i32 = arith.constant 128 : i32
    %5 = arith.muli %arg1, %c128_i32 : i32
    %6 = vector.broadcast %5 : i32 to vector<64x128xi32>
    %7 = arith.addi %4, %6 : vector<64x128xi32>
    %c128_i32_0 = arith.constant 128 : i32
    %8 = vector.broadcast %c128_i32_0 : i32 to vector<64x128xi32>
    %9 = arith.muli %3, %8 : vector<64x128xi32>
    %10 = arith.addi %9, %7 : vector<64x128xi32>
    %c0 = arith.constant 0 : index
    %11 = memref.load %arg2[%c0] : memref<1xi32, #tpu.memory_space<smem>>
    %c-1640531527_i32 = arith.constant -1640531527 : i32
    %12 = arith.muli %11, %c-1640531527_i32 : i32
    %13 = vector.broadcast %12 : i32 to vector<64x128xi32>
    %14 = arith.xori %10, %13 : vector<64x128xi32>
    %c16_i32 = arith.constant 16 : i32
    %15 = vector.broadcast %c16_i32 : i32 to vector<64x128xi32>
    %16 = arith.shrsi %14, %15 : vector<64x128xi32>
    %c65535_i32 = arith.constant 65535 : i32
    %17 = vector.broadcast %c65535_i32 : i32 to vector<64x128xi32>
    %18 = arith.andi %16, %17 : vector<64x128xi32>
    %19 = arith.xori %14, %18 : vector<64x128xi32>
    %c2146121005_i32 = arith.constant 2146121005 : i32
    %20 = vector.broadcast %c2146121005_i32 : i32 to vector<64x128xi32>
    %21 = arith.muli %19, %20 : vector<64x128xi32>
    %c15_i32 = arith.constant 15 : i32
    %22 = vector.broadcast %c15_i32 : i32 to vector<64x128xi32>
    %23 = arith.shrsi %21, %22 : vector<64x128xi32>
    %c131071_i32 = arith.constant 131071 : i32
    %24 = vector.broadcast %c131071_i32 : i32 to vector<64x128xi32>
    %25 = arith.andi %23, %24 : vector<64x128xi32>
    %26 = arith.xori %21, %25 : vector<64x128xi32>
    %c-2073057653_i32 = arith.constant -2073057653 : i32
    %27 = vector.broadcast %c-2073057653_i32 : i32 to vector<64x128xi32>
    %28 = arith.muli %26, %27 : vector<64x128xi32>
    %c16_i32_1 = arith.constant 16 : i32
    %29 = vector.broadcast %c16_i32_1 : i32 to vector<64x128xi32>
    %30 = arith.shrsi %28, %29 : vector<64x128xi32>
    %c65535_i32_2 = arith.constant 65535 : i32
    %31 = vector.broadcast %c65535_i32_2 : i32 to vector<64x128xi32>
    %32 = arith.andi %30, %31 : vector<64x128xi32>
    %33 = arith.xori %28, %32 : vector<64x128xi32>
    %c8_i32 = arith.constant 8 : i32
    %34 = vector.broadcast %c8_i32 : i32 to vector<64x128xi32>
    %35 = arith.shrsi %33, %34 : vector<64x128xi32>
    %c16777215_i32 = arith.constant 16777215 : i32
    %36 = vector.broadcast %c16777215_i32 : i32 to vector<64x128xi32>
    %37 = arith.andi %35, %36 : vector<64x128xi32>
    %38 = arith.sitofp %37 : vector<64x128xi32> to vector<64x128xf32>
    %cst = arith.constant 5.96046448E-8 : f32
    %39 = vector.broadcast %cst : f32 to vector<64x128xf32>
    %40 = arith.mulf %38, %39 : vector<64x128xf32>
    %cst_3 = arith.constant 9.99999997E-7 : f32
    %cst_4 = arith.constant 0.999998986 : f32
    %41 = vector.broadcast %cst_3 : f32 to vector<64x128xf32>
    %42 = arith.maximumf %41, %40 : vector<64x128xf32>
    %43 = vector.broadcast %cst_4 : f32 to vector<64x128xf32>
    %44 = arith.minimumf %43, %42 : vector<64x128xf32>
    %c0_5 = arith.constant 0 : index
    %c0_6 = arith.constant 0 : index
    %45 = vector.load %arg3[%c0_5, %c0_6] : memref<1x128xf32, #tpu.memory_space<vmem>>, vector<1x128xf32>
    %46 = vector.broadcast %45 : vector<1x128xf32> to vector<64x128xf32>
    %47 = arith.cmpf ogt, %44, %46 : vector<64x128xf32>
    %48 = arith.extui %47 : vector<64x128xi1> to vector<64x128xi32>
    %49 = arith.sitofp %48 : vector<64x128xi32> to vector<64x128xf32>
    %c0_7 = arith.constant 0 : index
    %c0_8 = arith.constant 0 : index
    %50 = vector.load %arg4[%c0_7, %c0_8] : memref<64x128xf32, #tpu.memory_space<vmem>>, vector<64x128xf32>
    tpu.vector_store %arg4[%c0_7, %c0_8], %49 {strides = array<i32>} : memref<64x128xf32, #tpu.memory_space<vmem>>, vector<64x128xf32>,
    return
  }
  func.func @transform_0(%arg0: i32, %arg1: i32, %arg2: memref<1xi32, #tpu.memory_space<smem>>) -> (i32, i32) {
    %c0_i32 = arith.constant 0 : i32
    %c0_i32_0 = arith.constant 0 : i32
    return %c0_i32, %arg1 : i32, i32
  }
  func.func @transform_1(%arg0: i32, %arg1: i32, %arg2: memref<1xi32, #tpu.memory_space<smem>>) -> (i32, i32) {
    %c0_i32 = arith.constant 0 : i32
    return %arg0, %arg1 : i32, i32
  }
}

</mosaic_0001>

<bundles_post_ra>
// kernel: tpu_custom_call.1
= control target key start
LH: loop header
LB: loop body
LE: loop exit
PB: predicated region body
PF: predicated region fallthrough
CT: control target
= control target key end

     0   :  { %v11_v0 = vlaneseq  ;;  %s359_s0 = inlined_call_operand.<no memory space> [shape: s32[1], index: 0, kind: input, shape index: {}]   ;;  %s360_s1 = inlined_call_operand.vmem [shape: f32[1,128], index: 1, kind: input, shape index: {}]   ;;  %s361_s2 = inlined_call_operand.hbm [shape: f32[64,128], index: 2, kind: output, shape index: {}]  }
   0x1   :  { %s52_s11 = smul.u32 2654435769, %s359_s0 }
   0x2   :  { %8 = vsyncpa [#allocation5], 0  ;;  %v12_v1 = vshrl.u32 %v11_v0, 7  ;;  %v31_v2 = vand.u32 127, %v11_v0 }
   0x3   :  { %v53_v3 = vstv %s52_s11 }
   0x4   :  { %v35_v4 = vmul.u32 128, %v12_v1  ;;  %v13_v5 = vadd.s32 8, %v12_v1  ;;  %v14_v6 = vadd.s32 16, %v12_v1  ;;  %v15_v7 = vadd.s32 24, %v12_v1 }
   0x5   :  { %v16_v8 = vadd.s32 32, %v12_v1  ;;  %v17_v9 = vadd.s32 40, %v12_v1  ;;  %v18_v10 = vadd.s32 48, %v12_v1  ;;  %v19_v11 = vadd.s32 56, %v12_v1 }
   0x6   :  { %v43_v12 = vadd.s32 %v35_v4, %v31_v2  ;;  %v36_v13 = vmul.u32 128, %v13_v5  ;;  %v37_v14 = vmul.u32 128, %v14_v6 }
   0x7   :  { %v38_v15 = vmul.u32 128, %v15_v7  ;;  %v39_v16 = vmul.u32 128, %v16_v8 }
   0x8   :  { %v54_v17 = vxor.u32 %v53_v3, %v43_v12  ;;  %v44_v18 = vadd.s32 %v36_v13, %v31_v2  ;;  %v45_v19 = vadd.s32 %v37_v14, %v31_v2  ;;  %v40_v20 = vmul.u32 128, %v17_v9 }
   0x9   :  { %v46_v21 = vadd.s32 %v38_v15, %v31_v2  ;;  %v47_v22 = vadd.s32 %v39_v16, %v31_v2  ;;  %v41_v23 = vmul.u32 128, %v18_v10  ;;  %v42_v24 = vmul.u32 128, %v19_v11 }
   0xa   :  { %v253_v25 = vshrl.u32 %v54_v17, 16  ;;  %v55_v26 = vxor.u32 %v53_v3, %v44_v18  ;;  %v56_v27 = vxor.u32 %v53_v3, %v45_v19  ;;  %v48_v28 = vadd.s32 %v40_v20, %v31_v2 }
   0xb   :  { %v57_v29 = vxor.u32 %v53_v3, %v46_v21  ;;  %v58_v30 = vxor.u32 %v53_v3, %v47_v22  ;;  %v49_v31 = vadd.s32 %v41_v23, %v31_v2  ;;  %v50_v32 = vadd.s32 %v42_v24, %v31_v2 }
   0xc   :  { %v78_v33 = vxor.u32 %v253_v25, %v54_v17  ;;  %v254_v34 = vshrl.u32 %v55_v26, 16  ;;  %v255_v35 = vshrl.u32 %v56_v27, 16  ;;  %v59_v36 = vxor.u32 %v53_v3, %v48_v28 }
   0xd   :  { %v256_v37 = vshrl.u32 %v57_v29, 16  ;;  %v257_v38 = vshrl.u32 %v58_v30, 16  ;;  %v60_v39 = vxor.u32 %v53_v3, %v49_v31  ;;  %v61_v40 = vxor.u32 %v53_v3, %v50_v32 }
   0xe   :  { %v86_v41 = vmul.u32 2146121005, %v78_v33  ;;  %v79_v42 = vxor.u32 %v254_v34, %v55_v26  ;;  %v80_v43 = vxor.u32 %v255_v35, %v56_v27  ;;  %v258_v44 = vshrl.u32 %v59_v36, 16 }
   0xf   :  { %v81_v45 = vxor.u32 %v256_v37, %v57_v29  ;;  %v82_v46 = vxor.u32 %v257_v38, %v58_v30  ;;  %v259_v47 = vshrl.u32 %v60_v39, 16  ;;  %v260_v48 = vshrl.u32 %v61_v40, 16 }
  0x10   :  { %v261_v49 = vshrl.u32 %v86_v41, 15  ;;  %v87_v50 = vmul.u32 2146121005, %v79_v42  ;;  %v88_v51 = vmul.u32 2146121005, %v80_v43  ;;  %v83_v52 = vxor.u32 %v258_v44, %v59_v36 }
  0x11   :  { %v89_v53 = vmul.u32 2146121005, %v81_v45  ;;  %v90_v54 = vmul.u32 2146121005, %v82_v46  ;;  %v84_v55 = vxor.u32 %v259_v47, %v60_v39  ;;  %v85_v56 = vxor.u32 %v260_v48, %v61_v40 }
  0x12   :  { %v110_v57 = vxor.u32 %v261_v49, %v86_v41  ;;  %v262_v58 = vshrl.u32 %v87_v50, 15  ;;  %v263_v59 = vshrl.u32 %v88_v51, 15  ;;  %v91_v60 = vmul.u32 2146121005, %v83_v52 }
  0x13   :  { %v264_v61 = vshrl.u32 %v89_v53, 15  ;;  %v265_v62 = vshrl.u32 %v90_v54, 15  ;;  %v92_v63 = vmul.u32 2146121005, %v84_v55  ;;  %v93_v0 = vmul.u32 2146121005, %v85_v56 }
  0x14   :  { %v118_v1 = vmul.u32 2221909643, %v110_v57  ;;  %v111_v2 = vxor.u32 %v262_v58, %v87_v50  ;;  %v112_v3 = vxor.u32 %v263_v59, %v88_v51  ;;  %v266_v4 = vshrl.u32 %v91_v60, 15 }
  0x15   :  { %v113_v5 = vxor.u32 %v264_v61, %v89_v53  ;;  %v114_v6 = vxor.u32 %v265_v62, %v90_v54  ;;  %v267_v7 = vshrl.u32 %v92_v63, 15  ;;  %v268_v8 = vshrl.u32 %v93_v0, 15  ;;  %v285_v53 = vld [vmem:[%s360_s1] ss:$0 sm:$0xff]  ;;  %s323_s1 = smov [#allocation4]  }
  0x16   :  { %v269_v9 = vshrl.u32 %v118_v1, 16  ;;  %v119_v10 = vmul.u32 2221909643, %v111_v2  ;;  %v120_v11 = vmul.u32 2221909643, %v112_v3  ;;  %v115_v12 = vxor.u32 %v266_v4, %v91_v60  ;;  %s242_s13 = sshll.u32 %s323_s1, 4  ;;  %s243_s13 = int_to_ptr.vmem [resolvable:$true] %s242_s13 }
  0x17   :  { %v121_v13 = vmul.u32 2221909643, %v113_v5  ;;  %v122_v14 = vmul.u32 2221909643, %v114_v6  ;;  %v116_v15 = vxor.u32 %v267_v7, %v92_v63  ;;  %v117_v16 = vxor.u32 %v268_v8, %v93_v0  ;;  %s298_s14 = scalar_lea.vmem %s243_s13, 1024  ;;  %p303_p1 = scmp.lt.s32.totalorder %s243_s13, %s243_s13 }
  0x18   :  { %v142_v17 = vxor.u32 %v269_v9, %v118_v1  ;;  %v270_v18 = vshrl.u32 %v119_v10, 16  ;;  %v271_v19 = vshrl.u32 %v120_v11, 16  ;;  %v123_v20 = vmul.u32 2221909643, %v115_v12  ;;  %p299_p0 = scmp.ne.s32.totalorder %s243_s13, %s298_s14  ;;  %p304_p2 = scmp.lt.s32.totalorder %s298_s14, %s298_s14 }
  0x19   :  { %v272_v21 = vshrl.u32 %v121_v13, 16  ;;  %v273_v22 = vshrl.u32 %v122_v14, 16  ;;  %v124_v23 = vmul.u32 2221909643, %v116_v15  ;;  %v125_v24 = vmul.u32 2221909643, %v117_v16 }
  0x1a   :  { %v277_v25 = vshrl.u32 %v142_v17, 8  ;;  %v143_v26 = vxor.u32 %v270_v18, %v119_v10  ;;  %v144_v27 = vxor.u32 %v271_v19, %v120_v11  ;;  %v274_v28 = vshrl.u32 %v123_v20, 16  ;;  %p305_p3 = por %p304_p2, %p303_p1 }
  0x1b   :  { %v145_v29 = vxor.u32 %v272_v21, %v121_v13  ;;  %v146_v30 = vxor.u32 %v273_v22, %v122_v14  ;;  %v275_v31 = vshrl.u32 %v124_v23, 16  ;;  %v276_v32 = vshrl.u32 %v125_v24, 16 }
  0x1c   :  { %v166_v33 = vcvt.s32.f32 %v277_v25  ;;  %v278_v34 = vshrl.u32 %v143_v26, 8  ;;  %v279_v35 = vshrl.u32 %v144_v27, 8  ;;  %v147_v36 = vxor.u32 %v274_v28, %v123_v20  ;;  %p306_p4 = pnand %p305_p3, %p299_p0 }
  0x1d   :  { %v280_v37 = vshrl.u32 %v145_v29, 8  ;;  %v281_v38 = vshrl.u32 %v146_v30, 8  ;;  %v148_v39 = vxor.u32 %v275_v31, %v124_v23  ;;  %v149_v40 = vxor.u32 %v276_v32, %v125_v24 }
  0x1e   :  { %v174_v41 = vmul.f32 5.9604645e-08, %v166_v33  ;;  %v167_v42 = vcvt.s32.f32 %v278_v34  ;;  %v168_v43 = vcvt.s32.f32 %v279_v35  ;;  %v282_v44 = vshrl.u32 %v147_v36, 8 }
  0x1f   :  { %v169_v45 = vcvt.s32.f32 %v280_v37  ;;  %v170_v46 = vcvt.s32.f32 %v281_v38  ;;  %v283_v47 = vshrl.u32 %v148_v39, 8  ;;  %v284_v48 = vshrl.u32 %v149_v40, 8 }
  0x20   :  { %v182_v49 = vmax.f32 %v174_v41, 1e-06  ;;  %v175_v50 = vmul.f32 5.9604645e-08, %v167_v42  ;;  %v176_v51 = vmul.f32 5.9604645e-08, %v168_v43  ;;  %v171_v52 = vcvt.s32.f32 %v282_v44 }
  0x21   :  { %v177_v54 = vmul.f32 5.9604645e-08, %v169_v45  ;;  %v178_v55 = vmul.f32 5.9604645e-08, %v170_v46  ;;  %v172_v56 = vcvt.s32.f32 %v283_v47  ;;  %v173_v57 = vcvt.s32.f32 %v284_v48 }
  0x22   :  { %v190_v58 = vmin.f32 %v182_v49, 0.999999  ;;  %v183_v59 = vmax.f32 %v175_v50, 1e-06  ;;  %v184_v60 = vmax.f32 %v176_v51, 1e-06 }
  0x23   :  { %v185_v61 = vmax.f32 %v177_v54, 1e-06  ;;  %v186_v62 = vmax.f32 %v178_v55, 1e-06  ;;  %v179_v63 = vmul.f32 5.9604645e-08, %v171_v52  ;;  %v180_v0 = vmul.f32 5.9604645e-08, %v172_v56 }
  0x24   :  { %vm205_vm0 = vcmp.gt.f32.partialorder %v190_v58, %v285_v53  ;;  %v191_v1 = vmin.f32 %v183_v59, 0.999999  ;;  %v192_v2 = vmin.f32 %v184_v60, 0.999999  ;;  %v322_v3 = vmov 0.0  }
  0x25   :  { %v286_v4 = vsel %vm205_vm0, 1.0, %v322_v3  ;;  %v193_v5 = vmin.f32 %v185_v61, 0.999999  ;;  %v194_v6 = vmin.f32 %v186_v62, 0.999999  ;;  %v181_v7 = vmul.f32 5.9604645e-08, %v173_v57 }
  0x26   :  { %229 = vst [vmem:[#allocation4] sm:$0xff] %v286_v4  ;;  %vm206_vm1 = vcmp.gt.f32.partialorder %v191_v1, %v285_v53  ;;  %vm207_vm2 = vcmp.gt.f32.partialorder %v192_v2, %v285_v53  ;;  %v187_v8 = vmax.f32 %v179_v63, 1e-06  ;;  %v188_v9 = vmax.f32 %v180_v0, 1e-06 }
  0x27   :  { %v287_v10 = vsel %vm206_vm1, 1.0, %v322_v3  ;;  %v288_v11 = vsel %vm207_vm2, 1.0, %v322_v3  ;;  %vm208_vm3 = vcmp.gt.f32.partialorder %v193_v5, %v285_v53  ;;  %vm209_vm4 = vcmp.gt.f32.partialorder %v194_v6, %v285_v53 }
  0x28   :  { %230 = vst [vmem:[#allocation4 + $0x8] sm:$0xff] %v287_v10  ;;  %231 = vst [vmem:[#allocation4 + $0x10] sm:$0xff] %v288_v11  ;;  %v289_v12 = vsel %vm208_vm3, 1.0, %v322_v3  ;;  %v290_v13 = vsel %vm209_vm4, 1.0, %v322_v3  ;;  %v195_v14 = vmin.f32 %v187_v8, 0.999999 }
  0x29   :  { %v196_v15 = vmin.f32 %v188_v9, 0.999999  ;;  %232 = vst [vmem:[#allocation4 + $0x18] sm:$0xff] %v289_v12  ;;  %233 = vst [vmem:[#allocation4 + $0x20] sm:$0xff] %v290_v13  ;;  %v189_v16 = vmax.f32 %v181_v7, 1e-06 }
  0x2a   :  { %vm210_vm5 = vcmp.gt.f32.partialorder %v195_v14, %v285_v53 }
  0x2b   :  { %vm211_vm6 = vcmp.gt.f32.partialorder %v196_v15, %v285_v53  ;;  %v291_v17 = vsel %vm210_vm5, 1.0, %v322_v3  ;;  %v197_v19 = vmin.f32 %v189_v16, 0.999999 }
  0x2c   :  { %v292_v18 = vsel %vm211_vm6, 1.0, %v322_v3  ;;  %234 = vst [vmem:[#allocation4 + $0x28] sm:$0xff] %v291_v17 }
  0x2d   :  { %235 = vst [vmem:[#allocation4 + $0x30] sm:$0xff] %v292_v18  ;;  %vm212_vm7 = vcmp.gt.f32.partialorder %v197_v19, %v285_v53 }
  0x2e   :  { %v293_v20 = vsel %vm212_vm7, 1.0, %v322_v3 }
  0x2f   :  { %236 = vst [vmem:[#allocation4 + $0x38] sm:$0xff] %v293_v20 }
  0x30   :  { %309 = shalt.err (!%p306_p4)
}
  0x31   :  { %s310_s17 = scalar_lea.hbm %s361_s2, 1024 }
  0x32   :  { %p311_p5 = scmp.ne.s32.totalorder %s361_s2, %s310_s17  ;;  %p314_p6 = scmp.lt.u32.totalorder %s310_s17, %s361_s2 }
  0x34   :  { %p316_p7 = pnand %p314_p6, %p311_p5 }
  0x36   :  { %319 = shalt.err (!%p316_p7)
}
  0x37   :  { %s324_s22 = smov 128   ;;  %s325_s23 = smov 8  }
  0x38   :  { %248 = dma.vmem_to_hbm [thread:$0]  %s243_s13, 1024, %s361_s2, [#allocation5], %s324_s22, %s324_s22, %s325_s23  }
  0x39   :  { %320 = dma.done.wait [#allocation5], 1024  }
  0x3a   :  { %321 = vsyncadd [#allocation5], 4294966272 }
  0x3b   :  { %252 = vsyncpa [#allocation5], 1 }

</bundles_post_ra>
